<compile_context>
chip_gen: v6e
topology: v6e:2x2x1
jax: 0.10.0
libtpu: 0.0.40
codegen_flags: <defaults>
</compile_context>

<pallas_src>
import jax
import jax.numpy as jnp
from jax import lax
from jax.experimental import pallas as pl
from jax.experimental.pallas import tpu as pltpu


def _make_fc_disc_kernel(num_layers, use_bf16):
    """Build the fused-MLP kernel body for `num_layers` Linear layers."""
    mm_dtype = jnp.bfloat16 if use_bf16 else jnp.float32

    def kernel(x_ref, *refs):
        o_ref = refs[-1]
        wb = refs[:-1]                      # (w0, b0, w1, b1, ..., wL, bL)

        # Input tile in natural (TB, in_dim) layout (no host-side transpose).
        h = x_ref[...]

        # Hidden layers.  Layer 0 contracts in_dim on BOTH operands
        # ((out0, in) x (TB, in) -> (out0, TB)), so the activation comes out
        # already transposed: features on sublanes, batch tile lane-dense.
        for l in range(num_layers - 1):
            w = wb[2 * l][...]              # (out, in), VMEM-resident
            b = wb[2 * l + 1][...]          # (out, 1), f32
            if l == 0:
                h = lax.dot_general(
                    w, h.astype(mm_dtype),
                    dimension_numbers=(((1,), (1,)), ((), ())),
                    preferred_element_type=jnp.float32) + b
            else:
                h = jnp.dot(w, h, preferred_element_type=jnp.float32) + b
            h = jnp.maximum(h, 0.0)         # bias/ReLU in f32 (VPU)
            if use_bf16:
                h = h.astype(jnp.bfloat16)  # bf16 intermediates: half the
                                            # VMEM store bytes; next MXU pass
                                            # consumes bf16 anyway.

        # Output layer.  Last weight is passed transposed: (in_last, out_dim).
        w_last = wb[-2][...]
        b_last = wb[-1][...]                # (out_dim, 1), f32
        if num_layers == 1:
            # No hidden layers: h is still (TB, in); contract in on both.
            logits = lax.dot_general(
                w_last.astype(mm_dtype), h.astype(mm_dtype),
                dimension_numbers=(((0,), (1,)), ((), ())),
                preferred_element_type=jnp.float32) + b_last      # (out, TB)
        elif w_last.shape[1] == 1:
            # out_dim == 1: VPU multiply + sublane reduce (XLU) instead of an
            # MXU pass whose result would occupy a single output lane.
            logits = jnp.sum(h.astype(jnp.float32) * w_last.astype(jnp.float32),
                             axis=0, keepdims=True) + b_last      # (1, TB)
        else:
            logits = lax.dot_general(
                w_last.astype(mm_dtype), h,
                dimension_numbers=(((0,), (0,)), ((), ())),
                preferred_element_type=jnp.float32) + b_last      # (out, TB)

        # Numerically-stable sigmoid (exp never overflows); exp -> EUP slot.
        z = jnp.exp(-jnp.abs(logits))
        r = 1.0 / (1.0 + z)
        sig = jnp.where(logits >= 0, r, z * r)

        o_ref[...] = sig.astype(o_ref.dtype)    # (out_dim, TB), lane-dense

    return kernel


def fc_discriminator(x, params, *, block_b=8192, use_bf16=True):
    """Fused FcDiscriminator forward.

    x      : (B, input_size); f32 or bf16 (bf16 input halves the dominant read)
    params : list of (W, b) in PyTorch nn.Linear layout, W: (out, in), b: (out,)
    Returns: (B * output_size, 1) f32, matching PyTorch `out.view(-1, 1)`.

    block_b : batch-tile width on the lane axis (multiple of 128).  Bigger is
              better until VMEM: sweep 2048-8192+ generally; up to ~32K-64K on
              v5e/v6e, cap ~16K-32K on v7x (64 MiB VMEM per TensorCore).
    use_bf16: bf16 matmul operands / intermediates (f32 accumulation); the
              elementwise math stays f32 (v5e has no bf16 VPU/EUP).
    """
    assert block_b % 128 == 0, "block_b must be a multiple of 128 lanes"
    B, in_dim = x.shape
    num_layers = len(params)
    out_dim = params[-1][0].shape[0]

    # Batch tile on the lane axis.  No host-side padding: the ragged last tile
    # is handled by Pallas OOB masking (independent batch columns).
    tb = min(block_b, pl.cdiv(B, 128) * 128)
    grid = (pl.cdiv(B, tb),)

    if use_bf16 and x.dtype != jnp.bfloat16:
        # One-time cast.  Ideally the caller already hands us bf16 activations
        # (then this is a no-op and the kernel's dominant input read is halved
        # with zero extra HBM passes).
        x = x.astype(jnp.bfloat16)

    flat_args = [x]
    in_specs = [pl.BlockSpec((tb, in_dim), lambda i: (i, 0))]

    for li, (w, b) in enumerate(params):
        is_last = li == num_layers - 1
        w_k = w.T if is_last else w                 # last layer as (in, out)
        if use_bf16:
            w_k = w_k.astype(jnp.bfloat16)
        b_k = b.reshape(-1, 1).astype(jnp.float32)  # (out, 1): lane broadcast
        flat_args += [w_k, b_k]
        # Constant block index -> parameters are DMA'd into VMEM once and stay
        # resident; Buffered(1) skips the pointless second buffer.
        in_specs += [
            pl.BlockSpec(w_k.shape, lambda i: (0, 0),
                         pipeline_mode=pl.Buffered(1)),
            pl.BlockSpec(b_k.shape, lambda i: (0, 0),
                         pipeline_mode=pl.Buffered(1)),
        ]

    # Rough live-VMEM estimate; raise the scoped limit only when a large tile
    # actually needs it (default scoped VMEM is well below physical capacity).
    in_bytes = 2 if use_bf16 else 4
    layer_out_dims = [w.shape[0] for (w, _) in params]
    param_bytes = sum(w.size * in_bytes + b.size * 4 for (w, b) in params)
    est_vmem = (2 * tb * in_dim * in_bytes          # double-buffered input
                + 2 * tb * out_dim * 4              # double-buffered output
                + tb * sum(layer_out_dims) * 4      # intermediates (f32 bound)
                + param_bytes)
    vmem_limit = None
    if est_vmem > 32 * 1024 * 1024:
        vmem_limit = min(int(est_vmem * 1.5), 128 * 1024 * 1024)

    out = pl.pallas_call(
        _make_fc_disc_kernel(num_layers, use_bf16),
        out_shape=jax.ShapeDtypeStruct((out_dim, B), jnp.float32),
        grid_spec=pltpu.PrefetchScalarGridSpec(
            num_scalar_prefetch=0,
            grid=grid,
            in_specs=in_specs,
            out_specs=pl.BlockSpec((out_dim, tb), lambda i: (0, i)),
        ),
        compiler_params=pltpu.CompilerParams(
            # Batch tiles are independent -> both v7x TensorCores participate.
            dimension_semantics=("parallel",),
            vmem_limit_bytes=vmem_limit,
        ),
    )(*flat_args)

    # PyTorch `out.view(-1, 1)` == batch-major flatten of the (B, out) result.
    return out.T.reshape(-1, 1)


def init_params(key, input_size, hidden_dims, output_size):
    """Deterministic synthetic parameters in PyTorch nn.Linear layout."""
    params = []
    dims = [input_size] + list(hidden_dims) + [output_size]
    for i in range(len(dims) - 1):
        key, kw, kb = jax.random.split(key, 3)
        fan_in, fan_out = dims[i], dims[i + 1]
        w = jax.random.normal(kw, (fan_out, fan_in), jnp.float32) / jnp.sqrt(fan_in)
        b = jax.random.normal(kb, (fan_out,), jnp.float32) * 0.01
        params.append((w, b))
    return params


if __name__ == "__main__":
    # FcDiscriminator(input_size=32, output_size=1, hidden_dims=[64, 32]).
    # B=300 is deliberately NOT a multiple of 128 to exercise the ragged tile.
    B, input_size, output_size = 300, 32, 1
    hidden_dims = [64, 32]

    key = jax.random.PRNGKey(0)
    key, kx = jax.random.split(key)
    x = jax.random.normal(kx, (B, input_size), jnp.float32)
    params = init_params(key, input_size, hidden_dims, output_size)

    # Default path: bf16 operands, large tile (single ragged tile at B=300).
    y = fc_discriminator(x, params)
    jax.block_until_ready(y)

    # Small-tile f32 path: exercises the multi-tile grid + ragged last tile
    # with resident single-buffered parameters.
    y_f32 = fc_discriminator(x, params, block_b=128, use_bf16=False)
    jax.block_until_ready(y_f32)

    # Pure-JAX reference (PyTorch semantics: y = x @ W.T + b).
    ref = x
    for i, (w, b) in enumerate(params):
        ref = jnp.dot(ref, w.T, precision=jax.lax.Precision.HIGHEST) + b
        if i < len(params) - 1:
            ref = jnp.maximum(ref, 0.0)
    ref = jax.nn.sigmoid(ref).reshape(-1, 1)

    assert y.shape == (B * output_size, 1)
    assert y_f32.shape == (B * output_size, 1)
    assert jnp.allclose(y_f32, ref, atol=3e-5), "f32 mismatch vs reference"
    # bf16 matmul operands -> looser tolerance (expected precision tradeoff).
    assert jnp.allclose(y, ref, atol=2e-2), "bf16 mismatch vs reference"

    print("KERNEL_OK")
</pallas_src>

<mosaic_0001>
module attributes {stable_mosaic.version = 11 : i64} {
  func.func @kernel(%arg0: i32, %arg1: memref<384x32xbf16, #tpu.memory_space<vmem>>, %arg2: memref<64x32xbf16, #tpu.memory_space<vmem>>, %arg3: memref<64x1xf32, #tpu.memory_space<vmem>>, %arg4: memref<32x64xbf16, #tpu.memory_space<vmem>>, %arg5: memref<32x1xf32, #tpu.memory_space<vmem>>, %arg6: memref<32x1xbf16, #tpu.memory_space<vmem>>, %arg7: memref<1x1xf32, #tpu.memory_space<vmem>>, %arg8: memref<1x384xf32, #tpu.memory_space<vmem>>) attributes {dimension_semantics = [#tpu.dimension_semantics<parallel>], iteration_bounds = array<i64: 1>, scalar_prefetch = 0 : i64, scratch_operands = 0 : i64, tpu.core_type = #tpu.core_type<tc>, window_params = [{transform_indices = @transform_0, window_bounds = array<i64: 384, 32>}, {pipeline_mode = #tpu.pipeline_mode<synchronous>, transform_indices = @transform_1, window_bounds = array<i64: 64, 32>}, {pipeline_mode = #tpu.pipeline_mode<synchronous>, transform_indices = @transform_2, window_bounds = array<i64: 64, 1>}, {pipeline_mode = #tpu.pipeline_mode<synchronous>, transform_indices = @transform_3, window_bounds = array<i64: 32, 64>}, {pipeline_mode = #tpu.pipeline_mode<synchronous>, transform_indices = @transform_4, window_bounds = array<i64: 32, 1>}, {pipeline_mode = #tpu.pipeline_mode<synchronous>, transform_indices = @transform_5, window_bounds = array<i64: 32, 1>}, {pipeline_mode = #tpu.pipeline_mode<synchronous>, transform_indices = @transform_6, window_bounds = array<i64: 1, 1>}, {transform_indices = @transform_7, window_bounds = array<i64: 1, 384>}]} {
    %c0 = arith.constant 0 : index
    %c0_0 = arith.constant 0 : index
    %0 = vector.load %arg1[%c0, %c0_0] : memref<384x32xbf16, #tpu.memory_space<vmem>>, vector<384x32xbf16>
    %c0_1 = arith.constant 0 : index
    %c0_2 = arith.constant 0 : index
    %1 = vector.load %arg2[%c0_1, %c0_2] : memref<64x32xbf16, #tpu.memory_space<vmem>>, vector<64x32xbf16>
    %c0_3 = arith.constant 0 : index
    %c0_4 = arith.constant 0 : index
    %2 = vector.load %arg3[%c0_3, %c0_4] : memref<64x1xf32, #tpu.memory_space<vmem>>, vector<64x1xf32>
    %cst = arith.constant dense<0.000000e+00> : vector<64x384xf32>
    %3 = tpu.matmul %1, %0, %cst {dimension_numbers = #tpu.dot_dimension_numbers<[1], [1], [0], [0], [0, 0, 1, 0], [], []>} : vector<64x32xbf16>, vector<384x32xbf16>, vector<64x384xf32> -> vector<64x384xf32>
    %4 = vector.broadcast %2 : vector<64x1xf32> to vector<64x384xf32>
    %5 = arith.addf %3, %4 : vector<64x384xf32>
    %cst_5 = arith.constant 0.000000e+00 : f32
    %6 = vector.broadcast %cst_5 : f32 to vector<64x384xf32>
    %7 = arith.maximumf %5, %6 : vector<64x384xf32>
    %8 = arith.truncf %7 : vector<64x384xf32> to vector<64x384xbf16>
    %c0_6 = arith.constant 0 : index
    %c0_7 = arith.constant 0 : index
    %9 = vector.load %arg4[%c0_6, %c0_7] : memref<32x64xbf16, #tpu.memory_space<vmem>>, vector<32x64xbf16>
    %c0_8 = arith.constant 0 : index
    %c0_9 = arith.constant 0 : index
    %10 = vector.load %arg5[%c0_8, %c0_9] : memref<32x1xf32, #tpu.memory_space<vmem>>, vector<32x1xf32>
    %cst_10 = arith.constant dense<0.000000e+00> : vector<32x384xf32>
    %11 = tpu.matmul %9, %8, %cst_10 {dimension_numbers = #tpu.dot_dimension_numbers<[1], [0], [0], [1], [0, 0, 1, 1], [], []>} : vector<32x64xbf16>, vector<64x384xbf16>, vector<32x384xf32> -> vector<32x384xf32>
    %12 = vector.broadcast %10 : vector<32x1xf32> to vector<32x384xf32>
    %13 = arith.addf %11, %12 : vector<32x384xf32>
    %cst_11 = arith.constant 0.000000e+00 : f32
    %14 = vector.broadcast %cst_11 : f32 to vector<32x384xf32>
    %15 = arith.maximumf %13, %14 : vector<32x384xf32>
    %16 = arith.truncf %15 : vector<32x384xf32> to vector<32x384xbf16>
    %c0_12 = arith.constant 0 : index
    %c0_13 = arith.constant 0 : index
    %17 = vector.load %arg6[%c0_12, %c0_13] : memref<32x1xbf16, #tpu.memory_space<vmem>>, vector<32x1xbf16>
    %c0_14 = arith.constant 0 : index
    %c0_15 = arith.constant 0 : index
    %18 = vector.load %arg7[%c0_14, %c0_15] : memref<1x1xf32, #tpu.memory_space<vmem>>, vector<1x1xf32>
    %19 = arith.extf %16 : vector<32x384xbf16> to vector<32x384xf32>
    %20 = arith.extf %17 : vector<32x1xbf16> to vector<32x1xf32>
    %21 = vector.broadcast %20 : vector<32x1xf32> to vector<32x384xf32>
    %22 = arith.mulf %19, %21 : vector<32x384xf32>
    %cst_16 = arith.constant dense<0.000000e+00> : vector<384xf32>
    %23 = vector.multi_reduction <add>, %22, %cst_16 [0] : vector<32x384xf32> to vector<384xf32>
    %24 = vector.shape_cast %23 : vector<384xf32> to vector<1x384xf32>
    %25 = vector.broadcast %18 : vector<1x1xf32> to vector<1x384xf32>
    %26 = arith.addf %24, %25 : vector<1x384xf32>
    %27 = math.absf %26 : vector<1x384xf32>
    %cst_17 = arith.constant 0.000000e+00 : f32
    %28 = vector.broadcast %cst_17 : f32 to vector<1x384xf32>
    %29 = arith.subf %28, %27 : vector<1x384xf32>
    %30 = math.exp %29 : vector<1x384xf32>
    %cst_18 = arith.constant 1.000000e+00 : f32
    %31 = vector.broadcast %cst_18 : f32 to vector<1x384xf32>
    %32 = arith.addf %31, %30 : vector<1x384xf32>
    %cst_19 = arith.constant 1.000000e+00 : f32
    %33 = vector.broadcast %cst_19 : f32 to vector<1x384xf32>
    %34 = arith.divf %33, %32 : vector<1x384xf32>
    %cst_20 = arith.constant 0.000000e+00 : f32
    %35 = vector.broadcast %cst_20 : f32 to vector<1x384xf32>
    %36 = arith.cmpf oge, %26, %35 : vector<1x384xf32>
    %37 = arith.mulf %30, %34 : vector<1x384xf32>
    %38 = arith.select %36, %34, %37 : vector<1x384xi1>, vector<1x384xf32>
    %c0_21 = arith.constant 0 : index
    %c0_22 = arith.constant 0 : index
    %39 = vector.load %arg8[%c0_21, %c0_22] : memref<1x384xf32, #tpu.memory_space<vmem>>, vector<1x384xf32>
    tpu.vector_store %arg8[%c0_21, %c0_22], %38 {strides = array<i32>} : memref<1x384xf32, #tpu.memory_space<vmem>>, vector<1x384xf32>,
    return
  }
  func.func @transform_0(%arg0: i32) -> (i32, i32) {
    %c0_i32 = arith.constant 0 : i32
    %c0_i32_0 = arith.constant 0 : i32
    return %arg0, %c0_i32 : i32, i32
  }
  func.func @transform_1(%arg0: i32) -> (i32, i32) {
    %c0_i32 = arith.constant 0 : i32
    %c0_i32_0 = arith.constant 0 : i32
    %c0_i32_1 = arith.constant 0 : i32
    return %c0_i32, %c0_i32_0 : i32, i32
  }
  func.func @transform_2(%arg0: i32) -> (i32, i32) {
    %c0_i32 = arith.constant 0 : i32
    %c0_i32_0 = arith.constant 0 : i32
    %c0_i32_1 = arith.constant 0 : i32
    return %c0_i32, %c0_i32_0 : i32, i32
  }
  func.func @transform_3(%arg0: i32) -> (i32, i32) {
    %c0_i32 = arith.constant 0 : i32
    %c0_i32_0 = arith.constant 0 : i32
    %c0_i32_1 = arith.constant 0 : i32
    return %c0_i32, %c0_i32_0 : i32, i32
  }
  func.func @transform_4(%arg0: i32) -> (i32, i32) {
    %c0_i32 = arith.constant 0 : i32
    %c0_i32_0 = arith.constant 0 : i32
    %c0_i32_1 = arith.constant 0 : i32
    return %c0_i32, %c0_i32_0 : i32, i32
  }
  func.func @transform_5(%arg0: i32) -> (i32, i32) {
    %c0_i32 = arith.constant 0 : i32
    %c0_i32_0 = arith.constant 0 : i32
    %c0_i32_1 = arith.constant 0 : i32
    return %c0_i32, %c0_i32_0 : i32, i32
  }
  func.func @transform_6(%arg0: i32) -> (i32, i32) {
    %c0_i32 = arith.constant 0 : i32
    %c0_i32_0 = arith.constant 0 : i32
    %c0_i32_1 = arith.constant 0 : i32
    return %c0_i32, %c0_i32_0 : i32, i32
  }
  func.func @transform_7(%arg0: i32) -> (i32, i32) {
    %c0_i32 = arith.constant 0 : i32
    %c0_i32_0 = arith.constant 0 : i32
    return %c0_i32, %arg0 : i32, i32
  }
}

</mosaic_0001>

<bundles_post_ra>
// kernel: tpu_custom_call.1
= control target key start
LH: loop header
LB: loop body
LE: loop exit
PB: predicated region body
PF: predicated region fallthrough
CT: control target
= control target key end

     0   :  { %s1368_s0 = inlined_call_operand.vmem [shape: bf16[300,32], index: 0, kind: input, shape index: {}]   ;;  %s1369_s1 = inlined_call_operand.vmem [shape: bf16[64,32], index: 1, kind: input, shape index: {}]   ;;  %s1370_s2 = inlined_call_operand.vmem [shape: f32[64,1], index: 2, kind: input, shape index: {}]   ;;  %s1371_s3 = inlined_call_operand.vmem [shape: bf16[32,64], index: 3, kind: input, shape index: {}]   ;;  %s1372_s4 = inlined_call_operand.vmem [shape: f32[32,1], index: 4, kind: input, shape index: {}]   ;;  %s1373_s5 = inlined_call_operand.vmem [shape: bf16[32,1], index: 5, kind: input, shape index: {}]   ;;  %s1374_s6 = inlined_call_operand.<no memory space> [shape: f32[1,1], index: 6, kind: input, shape index: {}]   ;;  %s1375_s7 = inlined_call_operand.hbm [shape: f32[1,300], index: 7, kind: output, shape index: {}]  }
   0x1   :  { %v12_v0 = vstv %s1374_s6 }
   0x2   :  { %13 = vst [vmem:[#allocation2] sm:$0x1] %v12_v0 }
   0x3   :  { %v1021_v1 = vld [vmem:[%s1368_s0 + $0x78] sm:$0xff]   ;;  %vm274_vm0 = vcmask 261120   ;;  %v1085_v4 = vmov 0   ;;  %v1024_v6 = vld [vmem:[%s1368_s0 + $0x70] sm:$0xff]   ;;  %v1028_v11 = vld [vmem:[%s1368_s0 + $0xa8] sm:$0xff]  }
   0x4   :  { %v1022_v2 = vld [vmem:[%s1368_s0 + $0xb8] sm:$0xff]   ;;  %995 = vmatprep.subr.msk.bf16.mxu0 %vm274_vm0, %v1021_v1  ;;  %1014 = vset.pattern.permute.xlu0 %v1085_v4  ;;  %v1025_v8 = vld [vmem:[%s1368_s0 + $0xb0] sm:$0xff]   ;;  %v1027_v13 = vld [vmem:[%s1368_s0 + $0x68] sm:$0xff]   ;;  %v351_v15 = vsel %vm274_vm0, %v1028_v11, 0 }
   0x5   :  { %v1023_v3 = vld [vmem:[%s1368_s0 + $0x38] sm:$0xff]   ;;  %1003 = vmatprep.subr.msk.bf16.mxu1 %vm274_vm0, %v1022_v2  ;;  %v357_v5 = vsel %vm274_vm0, %v1022_v2, 0  ;;  %1015 = vset.pattern.permute.xlu1 %v1085_v4  ;;  %v1026_v9 = vld [vmem:[%s1368_s0 + $0x30] sm:$0xff]   ;;  %v354_v10 = vsel %vm274_vm0, %v1025_v8, 0  ;;  %v1029_v14 = vld [vmem:[%s1368_s0 + $0x28] sm:$0xff]  }
   0x6   :  { %v309_v7 = vsel %vm274_vm0, %v1023_v3, 0  ;;  %960 = vmatpush3.bf16.xpose.msra.mxu1 %v357_v5  ;;  %v306_v12 = vsel %vm274_vm0, %v1026_v9, 0  ;;  %v1031_v16 = vld [vmem:[%s1368_s0 + $0xa0] sm:$0xff]   ;;  %v303_v17 = vsel %vm274_vm0, %v1029_v14, 0  ;;  %v1034_v22 = vld [vmem:[%s1368_s0 + $0x98] sm:$0xff]   ;;  %v92_v25 = vld [vmem:[%s1370_s2 + $0x30] sm:$0xff] }
   0x7   :  { %918 = vmatpush3.bf16.xpose.msra.mxu0 %v309_v7  ;;  %1004 = vmatprep.subr.msk.bf16.mxu1 %vm274_vm0, %v1025_v8  ;;  %v1030_v18 = vld [vmem:[%s1368_s0 + $0x60] sm:$0xff]   ;;  %v348_v21 = vsel %vm274_vm0, %v1031_v16, 0  ;;  %v1033_v24 = vld [vmem:[%s1368_s0 + $0x58] sm:$0xff]   ;;  %v345_v29 = vsel %vm274_vm0, %v1034_v22, 0  ;;  %v1037_v30 = vld [vmem:[%s1368_s0 + $0x90] sm:$0xff]  }
   0x8   :  { %996 = vmatprep.subr.msk.bf16.mxu0 %vm274_vm0, %v1024_v6  ;;  %v1032_v19 = vld [vmem:[%s1368_s0 + $0x20] sm:$0xff]   ;;  %v1035_v27 = vld [vmem:[%s1368_s0 + $0x18] sm:$0xff]   ;;  %126 = vperm.xlu0 %1014, %v92_v25   ;;  %v91_v31 = vld [vmem:[%s1370_s2 + $0x28] sm:$0xff] }
   0x9   :  { %v1186_v20 = vld [vmem:[%s1369_s1] sm:$0xff]   ;;  %v300_v23 = vsel %vm274_vm0, %v1032_v19, 0  ;;  %v93_v28 = vld [vmem:[%s1370_s2 + $0x38] sm:$0xff]  ;;  %v297_v32 = vsel %vm274_vm0, %v1035_v27, 0  ;;  %v1036_v33 = vld [vmem:[%s1368_s0 + $0x50] sm:$0xff]  }
   0xa   :  { %933 = vmatprep.mubr.msk.bf16.mxu0 %vm274_vm0, %v1186_v20  ;;  %975 = vmatprep.mubr.msk.bf16.mxu1 %vm274_vm0, %v1186_v20  ;;  %v90_v26 = vld [vmem:[%s1370_s2 + $0x20] sm:$0xff] }
   0xb   :  { %116 = vperm.xlu1 %1015, %v90_v26  }
   0xc   :  { %131 = vperm.xlu0 %1014, %v93_v28  }
   0xe   :  { %962 = vmatpush3.bf16.xpose.msra.mxu1 %v354_v10 }
   0xf   :  { %920 = vmatpush3.bf16.xpose.msra.mxu0 %v306_v12  ;;  %1005 = vmatprep.subr.msk.bf16.mxu1 %vm274_vm0, %v1028_v11 }
  0x10   :  { %997 = vmatprep.subr.msk.bf16.mxu0 %vm274_vm0, %v1027_v13 }
  0x16   :  { %964 = vmatpush3.bf16.xpose.msra.mxu1 %v351_v15 }
  0x17   :  { %922 = vmatpush3.bf16.xpose.msra.mxu0 %v303_v17  ;;  %1006 = vmatprep.subr.msk.bf16.mxu1 %vm274_vm0, %v1031_v16 }
  0x18   :  { %998 = vmatprep.subr.msk.bf16.mxu0 %vm274_vm0, %v1030_v18 }
  0x1e   :  { %966 = vmatpush3.bf16.xpose.msra.mxu1 %v348_v21 }
  0x1f   :  { %924 = vmatpush3.bf16.xpose.msra.mxu0 %v300_v23  ;;  %1007 = vmatprep.subr.msk.bf16.mxu1 %vm274_vm0, %v1034_v22 }
  0x20   :  { %999 = vmatprep.subr.msk.bf16.mxu0 %vm274_vm0, %v1033_v24 }
  0x21   :  { %14 = vsyncpa [#allocation4], 0  ;;  %121 = vperm.xlu1 %1015, %v91_v31   ;;  %v88_v34 = vld [vmem:[%s1370_s2 + $0x10] sm:$0xff]  ;;  %v89_v35 = vld [vmem:[%s1370_s2 + $0x18] sm:$0xff]  ;;  %v342_v39 = vsel %vm274_vm0, %v1037_v30, 0  ;;  %vm571_vm1 = vcmask 523264  }
  0x22   :  { %v1038_v36 = vld [vmem:[%s1368_s0 + $0x10] sm:$0xff]   ;;  %106 = vperm.xlu0 %1014, %v88_v34   ;;  %v86_v37 = vld [vmem:[%s1370_s2] sm:$0xff]  ;;  %v87_v38 = vld [vmem:[%s1370_s2 + $0x8] sm:$0xff] }
  0x23   :  { %v1040_v40 = vld [vmem:[%s1368_s0 + $0x88] sm:$0xff]   ;;  %v294_v41 = vsel %vm274_vm0, %v1038_v36, 0  ;;  %v537_v43 = vld [vmem:[%s1372_s4] sm:$0xff]  ;;  %v539_v49 = vld [vmem:[%s1372_s4 + $0x10] sm:$0xff] }
  0x24   :  { %v1039_v42 = vld [vmem:[%s1368_s0 + $0x48] sm:$0xff]   ;;  %v909_v44 = vld [vmem:[%s1373_s5] sm:$0xff]   ;;  %v540_v50 = vld [vmem:[%s1372_s4 + $0x18] sm:$0xff]  ;;  %v339_v52 = vsel %vm274_vm0, %v1040_v40, 0 }
  0x25   :  { %111 = vperm.xlu1 %1015, %v89_v35   ;;  %v538_v45 = vld [vmem:[%s1372_s4 + $0x8] sm:$0xff]  ;;  %v910_v47 = vunpack.c.l.bf16 %v909_v44  ;;  %v911_v48 = vunpack.c.h.bf16 %v909_v44  ;;  %v1043_v53 = vld [vmem:[%s1368_s0 + $0x80] sm:$0xff]   ;;  %v1047_v0 = vld [vmem:[%s1369_s1 + $0x10] sm:$0xff]  }
  0x26   :  { %968 = vmatpush3.bf16.xpose.msra.mxu1 %v345_v29  ;;  %96 = vperm.xlu0 %1014, %v86_v37   ;;  %v1041_v46 = vld [vmem:[%s1368_s0 + $0x8] sm:$0xff]   ;;  %v1042_v55 = vld [vmem:[%s1368_s0 + $0x40] sm:$0xff]   ;;  %v336_v61 = vsel %vm274_vm0, %v1043_v53, 0  ;;  %v1048_v1 = vld [vmem:[%s1369_s1 + $0x18] sm:$0xff]  }
  0x27   :  { %926 = vmatpush3.bf16.xpose.msra.mxu0 %v297_v32  ;;  %1008 = vmatprep.subr.msk.bf16.mxu1 %vm274_vm0, %v1037_v30  ;;  %v916_v51 = vld [vmem:[%s1373_s5 + $0x8] sm:$0xff]   ;;  %v291_v54 = vsel %vm274_vm0, %v1041_v46, 0  ;;  %v1016_v56 = vpack.i.bf16 %v911_v48, %v910_v47  ;;  %v1044_v58 = vld [vmem:[%s1368_s0] sm:$0xff]  }
  0x28   :  { %1000 = vmatprep.subr.msk.bf16.mxu0 %vm274_vm0, %v1036_v33  ;;  %v914_v57 = vunpack.c.l.bf16 %v916_v51  ;;  %v915_v59 = vunpack.c.h.bf16 %v916_v51  ;;  %v702_v60 = vld [vmem:[#allocation2] sm:$0x1]  ;;  %v288_v62 = vsel %vm274_vm0, %v1044_v58, 0  ;;  %v1046_v63 = vld [vmem:[%s1369_s1 + $0x8] sm:$0xff]  }
  0x29   :  { %101 = vperm.xlu1 %1015, %v87_v38   ;;  %v1312_v2 = vld [vmem:[%s1371_s3] sm:$0xff]  }
  0x2a   :  { %543 = vperm.xlu0 %1014, %v537_v43  }
  0x2d   :  { %548 = vperm.xlu1 %1015, %v538_v45  }
  0x2e   :  { %970 = vmatpush3.bf16.xpose.msra.mxu1 %v342_v39  ;;  %553 = vperm.xlu0 %1014, %v539_v49  }
  0x2f   :  { %928 = vmatpush3.bf16.xpose.msra.mxu0 %v294_v41  ;;  %1009 = vmatprep.subr.msk.bf16.mxu1 %vm274_vm0, %v1040_v40 }
  0x30   :  { %1001 = vmatprep.subr.msk.bf16.mxu0 %vm274_vm0, %v1039_v42 }
  0x31   :  { %558 = vperm.xlu1 %1015, %v540_v50  }
  0x32   :  { %1017 = vperm.xlu0 %1014, %v1016_v56  }
  0x35   :  { %731 = vperm.xlu1 %1015, %v914_v57  }
  0x36   :  { %972 = vmatpush3.bf16.xpose.msra.mxu1 %v339_v52  ;;  %736 = vperm.xlu0 %1014, %v915_v59  }
  0x37   :  { %930 = vmatpush3.bf16.xpose.msra.mxu0 %v291_v54  ;;  %1010 = vmatprep.subr.msk.bf16.mxu1 %vm274_vm0, %v1043_v53 }
  0x38   :  { %1002 = vmatprep.subr.msk.bf16.mxu0 %vm274_vm0, %v1042_v55 }
  0x39   :  { %780 = vperm.xlu1 %1015, %v702_v60   ;;  %v1050_v60 = vld [vmem:[%s1371_s3 + $0x8] sm:$0xff]   ;;  %s1087_s3 = smov [#allocation3]  }
  0x3a   :  { %s858_s13 = sshll.u32 %s1087_s3, 4  ;;  %s859_s13 = int_to_ptr.vmem [resolvable:$true] %s858_s13 }
  0x3b   :  { %s1063_s14 = scalar_lea.vmem %s859_s13, 48  ;;  %s1067_s2 = scalar_lea.vmem %s859_s13, 64 }
  0x3c   :  { %p1064_p0 = scmp.ne.s32.totalorder %s859_s13, %s1063_s14  ;;  %p1068_p1 = scmp.lt.s32.totalorder %s859_s13, %s859_s13 }
  0x3d   :  { %p1069_p2 = scmp.lt.s32.totalorder %s1067_s2, %s1063_s14 }
  0x3e   :  { %974 = vmatpush3.bf16.xpose.msra.mxu1 %v336_v61 }
  0x3f   :  { %932 = vmatpush3.bf16.xpose.msra.mxu0 %v288_v62  ;;  %p1070_p3 = por %p1069_p2, %p1068_p1 }
  0x41   :  { %p1071_p4 = pnand %p1070_p3, %p1064_p0 }
  0x45   :  { %976 = vmatmul.mubr.msk.bf16.vlgmr.msra.gmra.mxu1 %vm274_vm0, %v1046_v63 }
  0x46   :  { %934 = vmatmul.mubr.msk.bf16.vlgmr.msra.gmra.mxu0 %vm274_vm0, %v1186_v20  ;;  %979 = vmatprep.mubr.msk.bf16.mxu1 %vm274_vm0, %v1047_v0 }
  0x47   :  { %935 = vmatprep.mubr.msk.bf16.mxu0 %vm274_vm0, %v1046_v63 }
  0x4d   :  { %980 = vmatmul.mubr.msk.bf16.gmra.mxu1 %vm274_vm0, %v1048_v1 }
  0x4e   :  { %936 = vmatmul.mubr.msk.bf16.gmra.mxu0 %vm274_vm0, %v1046_v63  ;;  %610 = vmatprep.mubr.bf16.mxu1 %v1085_v4 }
  0x4f   :  { %937 = vmatprep.mubr.msk.bf16.mxu0 %vm274_vm0, %v1047_v0 }
  0x56   :  { %938 = vmatmul.mubr.msk.bf16.gmra.mxu0 %vm274_vm0, %v1047_v0 }
  0x57   :  { %939 = vmatprep.mubr.msk.bf16.mxu0 %vm274_vm0, %v1048_v1 }
  0x5e   :  { %940 = vmatmul.mubr.msk.bf16.gmra.mxu0 %vm274_vm0, %v1048_v1 }
  0x5f   :  { %991 = vmatprep.mubr.msk.bf16.mxu0 %vm571_vm1, %v1312_v2 }
  0x83   :  { %v127_v3 = vpop.permute.xlu0 %126 }
  0x86   :  { %v1316_v5 = vpop.permute.xlu1 %116 }
  0x87   :  { %v132_v9 = vpop.permute.xlu0 %131 }
  0x9c   :  { %v122_v11 = vpop.permute.xlu1 %121 }
  0x9d   :  { %v1326_v17 = vpop.permute.xlu0 %106 }
  0xa0   :  { %v1330_v20 = vpop.permute.xlu1 %111 }
  0xa1   :  { %v1335_v31 = vpop.permute.xlu0 %96 }
  0xa4   :  { %v102_v38 = vpop.permute.xlu1 %101 }
 0x105   :  { %v977_v6 = vpop.f32.mrf.mxu1 }
 0x106   :  { %v1318_v7 = vpop.f32.mrf.mxu0  ;;  %v475_v24 = vadd.f32 %v977_v6, %v1326_v17 }
 0x107   :  { %v466_v8 = vpop.f32.mrf.mxu1 }
 0x108   :  { %v1320_v10 = vpop.f32.mrf.mxu0  ;;  %v505_v36 = vmax.f32 %v475_v24, 0.0  ;;  %v467_v37 = vadd.f32 %v466_v8, %v1335_v31 }
 0x109   :  { %v978_v12 = vpop.f32.mrf.mxu1 }
 0x10a   :  { %v1322_v13 = vpop.f32.mrf.mxu0  ;;  %v478_v26 = vadd.f32 %v978_v12, %v1330_v20  ;;  %v499_v46 = vmax.f32 %v467_v37, 0.0 }
 0x10b   :  { %v469_v14 = vpop.f32.mrf.mxu1 }
 0x10c   :  { %v1324_v15 = vpop.f32.mrf.mxu0  ;;  %v508_v39 = vmax.f32 %v478_v26, 0.0  ;;  %v470_v40 = vadd.f32 %v469_v14, %v102_v38 }
 0x10d   :  { %v981_v16 = vpop.f32.mrf.mxu1 }
 0x10e   :  { %v1328_v18 = vpop.f32.mrf.mxu0  ;;  %v491_v19 = vadd.f32 %v981_v16, %v127_v3  ;;  %v526_v47 = vpack.c.bf16 %v508_v39, %v505_v36  ;;  %v502_v48 = vmax.f32 %v470_v40, 0.0 }
 0x10f   :  { %v482_v21 = vpop.f32.mrf.mxu1 }
 0x110   :  { %v405_v22 = vpop.f32.mrf.mxu0  ;;  %v483_v23 = vadd.f32 %v482_v21, %v1316_v5  ;;  %v517_v27 = vmax.f32 %v491_v19, 0.0  ;;  %v523_v51 = vpack.c.bf16 %v502_v48, %v499_v46 }
 0x111   :  { %v982_v25 = vpop.f32.mrf.mxu1 }
 0x112   :  { %v407_v28 = vpop.f32.mrf.mxu0  ;;  %v494_v29 = vadd.f32 %v982_v25, %v132_v9  ;;  %v511_v32 = vmax.f32 %v483_v23, 0.0 }
 0x113   :  { %v485_v30 = vpop.f32.mrf.mxu1  ;;  %v408_v23 = vadd.f32 %v407_v28, %v1330_v20 }
 0x114   :  { %v520_v33 = vmax.f32 %v494_v29, 0.0  ;;  %v409_v34 = vpop.f32.mrf.mxu0  ;;  %v486_v35 = vadd.f32 %v485_v30, %v122_v11  ;;  %v396_v29 = vadd.f32 %v1320_v10, %v1335_v31  ;;  %v398_v30 = vadd.f32 %v1322_v13, %v102_v38  ;;  %v549_v13 = vpop.permute.xlu1 %548 }
 0x115   :  { %v410_v1 = vadd.f32 %v409_v34, %v1330_v20  ;;  %v506_v20 = vmax.f32 %v408_v23, 0.0 }
 0x116   :  { %v532_v41 = vpack.c.bf16 %v520_v33, %v517_v27  ;;  %v413_v42 = vpop.f32.mrf.mxu0  ;;  %v514_v43 = vmax.f32 %v486_v35, 0.0  ;;  %v404_v27 = vadd.f32 %v1328_v18, %v1326_v17  ;;  %v498_v35 = vmax.f32 %v396_v29, 0.0 }
 0x117   :  { %v414_v14 = vadd.f32 %v413_v42, %v1316_v5  ;;  %v507_v25 = vmax.f32 %v410_v1, 0.0 }
 0x118   :  { %v529_v44 = vpack.c.bf16 %v514_v43, %v511_v32  ;;  %v415_v45 = vpop.f32.mrf.mxu0  ;;  %983 = vmatprep.subr.bf16.mxu0 %v532_v41  ;;  %v503_v34 = vmax.f32 %v404_v27, 0.0 }
 0x119   :  { %984 = vmatpush3.bf16.msra.mxu0 %v532_v41  ;;  %v416_v61 = vadd.f32 %v415_v45, %v1316_v5  ;;  %v509_v5 = vmax.f32 %v414_v14, 0.0  ;;  %v559_v41 = vpop.permute.xlu1 %558 }
 0x11a   :  { %v417_v49 = vpop.f32.mrf.mxu0  ;;  %985 = vmatprep.subr.bf16.mxu0 %v529_v44  ;;  %v524_v18 = vpack.c.bf16 %v506_v20, %v503_v34  ;;  %v783_v20 = vlaneseq }
 0x11b   :  { %v418_v63 = vadd.f32 %v417_v49, %v122_v11  ;;  %v510_v19 = vmax.f32 %v416_v61, 0.0 }
 0x11c   :  { %v419_v50 = vpop.f32.mrf.mxu0  ;;  %vm849_vm5 = vcmp.lt.s32.totalorder %v783_v20, 384 }
 0x11d   :  { %986 = vmatpush3.bf16.msra.mxu0 %v529_v44  ;;  %v420_v55 = vadd.f32 %v419_v50, %v122_v11  ;;  %v400_v11 = vadd.f32 %v1324_v15, %v102_v38  ;;  %v394_v15 = vadd.f32 %v1318_v7, %v1335_v31  ;;  %v544_v7 = vpop.permute.xlu0 %543 }
 0x11e   :  { %v423_v52 = vpop.f32.mrf.mxu0  ;;  %987 = vmatprep.subr.bf16.mxu0 %v526_v47 }
 0x11f   :  { %v424_v58 = vadd.f32 %v423_v52, %v127_v3  ;;  %v513_v6 = vmax.f32 %v420_v55, 0.0  ;;  %v501_v32 = vmax.f32 %v400_v11, 0.0  ;;  %v497_v37 = vmax.f32 %v394_v15, 0.0 }
 0x120   :  { %v425_v53 = vpop.f32.mrf.mxu0 }
 0x121   :  { %988 = vmatpush3.bf16.msra.mxu0 %v526_v47  ;;  %v426_v56 = vadd.f32 %v425_v53, %v127_v3  ;;  %v515_v16 = vmax.f32 %v424_v58, 0.0  ;;  %v406_v3 = vadd.f32 %v405_v22, %v1326_v17  ;;  %v528_v26 = vpack.c.bf16 %v513_v6, %v510_v19  ;;  %v554_v38 = vpop.permute.xlu0 %553 }
 0x122   :  { %v427_v54 = vpop.f32.mrf.mxu0  ;;  %989 = vmatprep.subr.bf16.mxu0 %v523_v51  ;;  %v500_v17 = vmax.f32 %v398_v30, 0.0  ;;  %v522_v36 = vpack.c.bf16 %v501_v32, %v498_v35 }
 0x123   :  { %v428_v57 = vadd.f32 %v427_v54, %v132_v9  ;;  %v516_v8 = vmax.f32 %v426_v56, 0.0  ;;  %v504_v22 = vmax.f32 %v406_v3, 0.0 }
 0x124   :  { %v429_v59 = vpop.f32.mrf.mxu0  ;;  %v521_v10 = vpack.c.bf16 %v500_v17, %v497_v37  ;;  %v1360_v37 = vshrl.u32 %v783_v20, 7 }
 0x125   :  { %v430_v62 = vadd.f32 %v429_v59, %v132_v9  ;;  %990 = vmatpush3.bf16.msra.mxu0 %v523_v51  ;;  %v518_v0 = vmax.f32 %v428_v57, 0.0  ;;  %v512_v9 = vmax.f32 %v418_v63, 0.0  ;;  %v525_v33 = vpack.c.bf16 %v507_v25, %v504_v22 }
 0x127   :  { %v519_v12 = vmax.f32 %v430_v62, 0.0  ;;  %v530_v24 = vpack.c.bf16 %v518_v0, %v515_v16  ;;  %v527_v28 = vpack.c.bf16 %v512_v9, %v509_v5 }
 0x128   :  { %992 = vmatmul.mubr.msk.bf16.vlgmr.msra.gmra.mxu0 %vm571_vm1, %v1050_v60 }
 0x129   :  { %v531_v21 = vpack.c.bf16 %v519_v12, %v516_v8 }
 0x12b   :  { %586 = vmatprep.subr.bf16.mxu1 %v531_v21 }
 0x12c   :  { %587 = vmatpush1.bf16.msra.mxu1 %v530_v24 }
 0x12d   :  { %588 = vmatprep.subr.bf16.mxu1 %v528_v26 }
 0x130   :  { %589 = vmatpush1.bf16.msra.mxu1 %v527_v28 }
 0x131   :  { %590 = vmatprep.subr.bf16.mxu1 %v525_v33 }
 0x134   :  { %591 = vmatpush1.bf16.msra.mxu1 %v524_v18 }
 0x135   :  { %592 = vmatprep.subr.bf16.mxu1 %v522_v36 }
 0x138   :  { %593 = vmatpush1.bf16.msra.mxu1 %v521_v10 }
 0x13b   :  { %904 = vmatmul.mubr.msk.bf16.vlgmr.msra.gmra.mxu1 %vm571_vm1, %v1312_v2 }
 0x13c   :  { %620 = vmatprep.mubr.bf16.mxu1 %v1085_v4  ;;  %v1018_v4 = vpop.permute.xlu0 %1017 }
 0x13d   :  { %v1020_v52 = vunpack.i.h.bf16 %v1018_v4  ;;  %v1019_v53 = vunpack.i.l.bf16 %v1018_v4 }
 0x140   :  { %v737_v63 = vpop.permute.xlu0 %736 }
 0x143   :  { %905 = vmatmul.mubr.msk.bf16.gmra.mxu1 %vm571_vm1, %v1050_v60  ;;  %v732_v60 = vpop.permute.xlu1 %731 }
 0x1e8   :  { %v993_v31 = vpop.f32.mrf.mxu0 }
 0x1e9   :  { %v674_v40 = vadd.f32 %v993_v31, %v554_v38 }
 0x1ea   :  { %v665_v39 = vpop.f32.mrf.mxu0 }
 0x1eb   :  { %v666_v43 = vadd.f32 %v665_v39, %v544_v7  ;;  %v688_v46 = vmax.f32 %v674_v40, 0.0 }
 0x1ec   :  { %v994_v42 = vpop.f32.mrf.mxu0 }
 0x1ed   :  { %v677_v44 = vadd.f32 %v994_v42, %v559_v41  ;;  %v682_v49 = vmax.f32 %v666_v43, 0.0 }
 0x1ee   :  { %v668_v45 = vpop.f32.mrf.mxu0 }
 0x1ef   :  { %v691_v47 = vmax.f32 %v677_v44, 0.0  ;;  %v669_v48 = vadd.f32 %v668_v45, %v549_v13 }
 0x1f1   :  { %v697_v2 = vpack.c.bf16 %v691_v47, %v688_v46  ;;  %v685_v50 = vmax.f32 %v669_v48, 0.0 }
 0x1f3   :  { %v694_v51 = vpack.c.bf16 %v685_v50, %v682_v49  ;;  %v711_v54 = vunpack.c.l.bf16 %v697_v2  ;;  %v714_v57 = vunpack.c.h.bf16 %v697_v2  ;;  %v781_v2 = vpop.permute.xlu1 %780 }
 0x1f5   :  { %v705_v55 = vunpack.c.l.bf16 %v694_v51  ;;  %v708_v56 = vunpack.c.h.bf16 %v694_v51  ;;  %v747_v61 = vmul.f32 %v732_v60, %v711_v54  ;;  %v750_v0 = vmul.f32 %v737_v63, %v714_v57 }
 0x1f7   :  { %v741_v58 = vmul.f32 %v1019_v53, %v705_v55  ;;  %v744_v59 = vmul.f32 %v1020_v52, %v708_v56 }
 0x1f9   :  { %v769_v62 = vadd.f32 %v744_v59, %v741_v58 }
 0x1fb   :  { %v770_v1 = vadd.f32 %v769_v62, %v747_v61  ;;  %v612_v6 = vpop.f32.mrf.mxu1 }
 0x1fc   :  { %v613_v16 = vadd.f32 %v612_v6, %v544_v7 }
 0x1fd   :  { %v771_v8 = vadd.f32 %v770_v1, %v750_v0  ;;  %v614_v12 = vpop.f32.mrf.mxu1 }
 0x1fe   :  { %v615_v19 = vadd.f32 %v614_v12, %v544_v7  ;;  %v680_v25 = vmax.f32 %v613_v16, 0.0 }
 0x1ff   :  { %v772_v14 = vrot.slane %v771_v8, 4  ;;  %v616_v3 = vpop.f32.mrf.mxu1 }
 0x200   :  { %v617_v21 = vadd.f32 %v616_v3, %v549_v13  ;;  %v681_v5 = vmax.f32 %v615_v19, 0.0 }
 0x201   :  { %v773_v23 = vadd.f32 %v772_v14, %v771_v8  ;;  %v618_v9 = vpop.f32.mrf.mxu1 }
 0x202   :  { %v683_v24 = vmax.f32 %v617_v21, 0.0  ;;  %v619_v11 = vadd.f32 %v618_v9, %v549_v13 }
 0x203   :  { %v622_v26 = vpop.f32.mrf.mxu1  ;;  %v774_v27 = vrot.slane %v773_v23, 2 }
 0x204   :  { %v684_v29 = vmax.f32 %v619_v11, 0.0  ;;  %v692_v22 = vpack.c.bf16 %v683_v24, %v680_v25  ;;  %v623_v32 = vadd.f32 %v622_v26, %v554_v38 }
 0x205   :  { %v624_v30 = vpop.f32.mrf.mxu1  ;;  %v775_v34 = vadd.f32 %v774_v27, %v773_v23 }
 0x206   :  { %v693_v28 = vpack.c.bf16 %v684_v29, %v681_v5  ;;  %v625_v15 = vadd.f32 %v624_v30, %v554_v38  ;;  %v703_v35 = vunpack.c.l.bf16 %v692_v22  ;;  %v706_v17 = vunpack.c.h.bf16 %v692_v22 }
 0x207   :  { %v626_v33 = vpop.f32.mrf.mxu1  ;;  %v686_v31 = vmax.f32 %v623_v32, 0.0  ;;  %v776_v43 = vrot.slane %v775_v34, 1  ;;  %v785_v38 = vsub.s32 0, %v1360_v37 }
 0x208   :  { %v627_v18 = vadd.f32 %v626_v33, %v559_v41  ;;  %v704_v10 = vunpack.c.l.bf16 %v693_v28  ;;  %v707_v7 = vunpack.c.h.bf16 %v693_v28  ;;  %v687_v40 = vmax.f32 %v625_v15, 0.0 }
 0x209   :  { %v628_v36 = vpop.f32.mrf.mxu1  ;;  %v739_v44 = vmul.f32 %v1019_v53, %v703_v35  ;;  %v742_v45 = vmul.f32 %v1020_v52, %v706_v17  ;;  %v777_v55 = vadd.f32 %v776_v43, %v775_v34  ;;  %v786_v57 = vrot.slane %v781_v2, %v785_v38 }
 0x20a   :  { %v629_v13 = vadd.f32 %v628_v36, %v559_v41  ;;  %v689_v39 = vmax.f32 %v627_v18, 0.0  ;;  %v740_v47 = vmul.f32 %v1019_v53, %v704_v10  ;;  %v743_v48 = vmul.f32 %v1020_v52, %v707_v7 }
 0x20b   :  { %v751_v41 = vadd.f32 %v742_v45, %v739_v44  ;;  %v789_v6 = vadd.f32 %v786_v57, %v777_v55  ;;  %v1086_v10 = vmov 1966171168  }
 0x20c   :  { %v690_v42 = vmax.f32 %v629_v13, 0.0  ;;  %v695_v46 = vpack.c.bf16 %v689_v39, %v686_v31  ;;  %v760_v58 = vadd.f32 %v743_v48, %v740_v47  ;;  %v825_v7 = vunpack.c.l.s4 %v1086_v10 }
 0x20d   :  { %v792_v14 = vand.u32 2147483647, %v789_v6  ;;  %vm813_vm4 = vcmp.ge.f32.partialorder %v789_v6, 0.0 }
 0x20e   :  { %v696_v49 = vpack.c.bf16 %v690_v42, %v687_v40  ;;  %v709_v50 = vunpack.c.l.bf16 %v695_v46  ;;  %v712_v4 = vunpack.c.h.bf16 %v695_v46  ;;  %v826_v31 = vunpack.c.0.s8 %v825_v7 }
 0x20f   :  { %v795_v23 = vsub.f32 0.0, %v792_v14 }
 0x210   :  { %v710_v51 = vunpack.c.l.bf16 %v696_v49  ;;  %v713_v54 = vunpack.c.h.bf16 %v696_v49  ;;  %v745_v56 = vmul.f32 %v732_v60, %v709_v50  ;;  %v748_v61 = vmul.f32 %v737_v63, %v712_v4 }
 0x211   :  { %v829_v45 = vsub.s32 %v826_v31, %v1360_v37 }
 0x212   :  { %v746_v59 = vmul.f32 %v732_v60, %v710_v51  ;;  %v752_v62 = vadd.f32 %v751_v41, %v745_v56  ;;  %v749_v0 = vmul.f32 %v737_v63, %v713_v54  ;;  %v800_v60 = vmul.f32 1.442695, %v795_v23 }
 0x214   :  { %v761_v1 = vadd.f32 %v760_v58, %v746_v59  ;;  %v753_v8 = vadd.f32 %v752_v62, %v748_v61  ;;  %1051 = vpow2.f32 %v800_v60 }
 0x216   :  { %v762_v53 = vadd.f32 %v761_v1, %v749_v0  ;;  %v754_v52 = vrot.slane %v753_v8, 4 }
 0x218   :  { %v763_v12 = vrot.slane %v762_v53, 4  ;;  %v755_v16 = vadd.f32 %v754_v52, %v753_v8 }
 0x21a   :  { %v764_v3 = vadd.f32 %v763_v12, %v762_v53  ;;  %v756_v19 = vrot.slane %v755_v16, 2 }
 0x21c   :  { %v765_v21 = vrot.slane %v764_v3, 2  ;;  %v757_v9 = vadd.f32 %v756_v19, %v755_v16 }
 0x21e   :  { %v766_v24 = vadd.f32 %v765_v21, %v764_v3  ;;  %v758_v11 = vrot.slane %v757_v9, 1 }
 0x220   :  { %v767_v25 = vrot.slane %v766_v24, 1  ;;  %v759_v26 = vadd.f32 %v758_v11, %v757_v9 }
 0x221   :  { %v1052_v15 = vpop.eup %1051 }
 0x222   :  { %v768_v27 = vadd.f32 %v767_v25, %v766_v24  ;;  %v787_v63 = vadd.f32 %v786_v57, %v759_v26  ;;  %v804_v34 = vadd.f32 1.0, %v1052_v15 }
 0x224   :  { %v788_v5 = vadd.f32 %v786_v57, %v768_v27  ;;  %v790_v29 = vand.u32 2147483647, %v787_v63  ;;  %vm811_vm2 = vcmp.ge.f32.partialorder %v787_v63, 0.0 }
 0x226   :  { %v791_v22 = vand.u32 2147483647, %v788_v5  ;;  %v793_v30 = vsub.f32 0.0, %v790_v29  ;;  %vm812_vm3 = vcmp.ge.f32.partialorder %v788_v5, 0.0 }
 0x228   :  { %v794_v28 = vsub.f32 0.0, %v791_v22  ;;  %v796_v32 = vmul.f32 1.442695, %v793_v30 }
 0x22a   :  { %v798_v33 = vmul.f32 1.442695, %v794_v28  ;;  %1053 = vpow2.f32 %v796_v32 }
 0x22c   :  { %1055 = vpow2.f32 %v798_v33 }
 0x22d   :  { %1057 = vrcp.f32 %v804_v34 }
 0x237   :  { %v1054_v35 = vpop.eup %1053 }
 0x238   :  { %v802_v18 = vadd.f32 1.0, %v1054_v35 }
 0x239   :  { %v1056_v17 = vpop.eup %1055 }
 0x23a   :  { %v803_v36 = vadd.f32 1.0, %v1056_v17  ;;  %1059 = vrcp.f32 %v802_v18  ;;  %v1058_v13 = vpop.eup %1057 }
 0x23b   :  { %v816_v40 = vmul.f32 %v1058_v13, %v1052_v15 }
 0x23c   :  { %1061 = vrcp.f32 %v803_v36 }
 0x23d   :  { %v819_v47 = vsel %vm813_vm4, %v1058_v13, %v816_v40 }
 0x23e   :  { %v837_v2 = vrot.slane %v819_v47, %v829_v45 }
 0x247   :  { %v1060_v39 = vpop.eup %1059 }
 0x248   :  { %v814_v43 = vmul.f32 %v1060_v39, %v1054_v35 }
 0x249   :  { %v1062_v42 = vpop.eup %1061 }
 0x24a   :  { %v815_v44 = vmul.f32 %v1062_v42, %v1056_v17  ;;  %v817_v46 = vsel %vm811_vm2, %v1060_v39, %v814_v43 }
 0x24c   :  { %v818_v38 = vsel %vm812_vm3, %v1062_v42, %v815_v44 }
 0x24d   :  { %v823_v48 = vcombine.low %v817_v46, %v818_v38 }
 0x24f   :  { %v830_v49 = vrot.slane %v823_v48, %v829_v45 }
 0x251   :  { %v838_v50 = vcombine.low %v830_v49, %v837_v2 }
 0x253   :  { %v845_v4 = vrot.slane %v838_v50, %v829_v45 }
 0x255   :  { %851 = vst.msk [vmem:[#allocation3] sm:$0x7] %vm849_vm5, %v845_v4 }
 0x256   :  { %1074 = shalt.err (!%p1071_p4)
}
 0x257   :  { %861 = dma.vmem_to_hbm [thread:$0]  %s859_s13, 48, %s1375_s7, [#allocation4]  }
 0x258   :  { %1083 = dma.done.wait [#allocation4], 48  }
 0x259   :  { %1084 = vsyncadd [#allocation4], 4294967248 }
 0x25a   :  { %865 = vsyncpa [#allocation4], 1 }

</bundles_post_ra>
